<compile_context>
chip_gen: v7x
topology: tpu7x:2x2x1
jax: 0.10.0
libtpu: 0.0.40
codegen_flags: <defaults>
</compile_context>

<pallas_src>
import jax
import jax.numpy as jnp
from jax.experimental import pallas as pl
from jax.experimental.pallas import tpu as pltpu


# ----------------------------------------------------------------------------
# Pallas kernel: one (batch, pixel-tile) grid step, channel-first (C, T) layout
# ----------------------------------------------------------------------------
def _oab_kernel(x_ref, kT_ref, a_ref,
                wp1_ref, bp1_ref, wp2_ref, bp2_ref, bu_ref,
                out_ref):
    cdt = jnp.bfloat16                       # MXU compute dtype (f32 accumulate)

    x = x_ref[0].astype(cdt)                 # (C, T) pixel tile

    # ---- f_pixel(x) -> query (Kc, T).  BN scale folded into the weights;
    #      key_channels**-0.5 folded into the second stage's weight/bias.
    h = jnp.maximum(
        jnp.dot(wp1_ref[...], x, preferred_element_type=jnp.float32)
        + bp1_ref[...], 0.0)
    q = jnp.maximum(
        jnp.dot(wp2_ref[...], h.astype(cdt), preferred_element_type=jnp.float32)
        + bp2_ref[...], 0.0)

    # ---- attention over regions: simT[m, t] = sum_c k[m, c] * q[c, t]
    #      (key already transposed + scale folded; softmax over the M axis).
    simT = jnp.dot(kT_ref[0], q.astype(cdt),
                   preferred_element_type=jnp.float32)          # (M, T)
    simT = simT - jnp.max(simT, axis=0, keepdims=True)
    e = jnp.exp(simT)
    attn = e * pl.reciprocal(jnp.sum(e, axis=0, keepdims=True), approx=True)

    # ---- fused value/f_up:  out = ReLU(A @ attn + bu), A = (su*wu)^T @ v.
    out = jnp.maximum(
        jnp.dot(a_ref[0], attn.astype(cdt), preferred_element_type=jnp.float32)
        + bu_ref[...], 0.0)
    out_ref[0] = out.astype(out_ref.dtype)


# ----------------------------------------------------------------------------
# Tiling / VMEM policy per TPU generation
# ----------------------------------------------------------------------------
def _tile_policy(in_channels):
    """Return (target pixel-tile, tile granularity, vmem_limit_bytes)."""
    kind = ""
    try:
        kind = jax.devices()[0].device_kind.lower()
    except Exception:
        pass
    try:
        vmem = pltpu.get_tpu_info().vmem_capacity_bytes
    except Exception:
        vmem = 128 * 1024 * 1024

    is_v5e = ("v5 lite" in kind) or ("v5e" in kind) or ("v5litepod" in kind)
    gran = 128 if is_v5e else 256            # v6e/v7x MXU is 2x256^2; v5e 4x128^2

    if vmem <= 64 * 1024 * 1024:             # v7x: 64 MiB physical per TC
        target = 512 if in_channels >= 1024 else 1024
        vmem_limit = 48 * 1024 * 1024
    else:                                    # v5e / v6e: 128 MiB physical
        target = 1024
        vmem_limit = 100 * 1024 * 1024       # raise past the 16/32 MiB default
    return target, gran, vmem_limit


def _choose_hw_tile(hw, target, gran):
    """Largest gran-multiple divisor of hw that is <= target; otherwise a
    gran-multiple tile <= target (the caller zero-pads hw up to a multiple)."""
    best = None
    t = gran
    while t <= min(hw, target):
        if hw % t == 0:
            best = t
        t += gran
    if best is not None:
        return best
    return min(-(-hw // gran) * gran, target)


# ----------------------------------------------------------------------------
# Weight preparation: fold BN scale (and attention scale) into weights
# ----------------------------------------------------------------------------
def _prepare_weights(params, key_channels, compute_dtype=jnp.bfloat16):
    (wp1, sp1, bp1, wp2, sp2, bp2,
     wo1, so1, bo1, wo2, so2, bo2,
     wd, sd, bd, wu, su, bu) = params
    a = float(key_channels) ** -0.5
    assert a > 0.0                           # scale must commute with ReLU

    def fold(w, s):                          # (Cin, Cout)*(1, Cout) -> (Cout, Cin)
        return jnp.transpose(w * s).astype(jnp.float32)

    def col(b):                              # (1, Cout) -> (Cout, 1), f32
        return jnp.transpose(b).astype(jnp.float32)

    # Weights that live inside the per-tile kernel (bf16 MXU operands).
    kern = dict(
        wp1=fold(wp1, sp1).astype(compute_dtype), bp1=col(bp1),
        wp2=fold(wp2, sp2 * a).astype(compute_dtype), bp2=col(bp2 * a),
        bu=col(bu),
    )
    # Weights used only by the (tiny, per-batch) hoisted proxy path (f32).
    pre = dict(
        wo1=fold(wo1, so1), bo1=col(bo1),
        wo2=fold(wo2, so2), bo2=col(bo2),
        wd=fold(wd, sd), bd=col(bd),
        wu=fold(wu, su),                     # (C, Kc)
    )
    return kern, pre


# ----------------------------------------------------------------------------
# Public wrapper
# ----------------------------------------------------------------------------
def object_attention_block(x_nchw, proxy_nchw, params, *, key_channels, scale=1,
                           block_hw=None, compute_dtype=jnp.bfloat16):
    """x_nchw: (N, C, H, W); proxy_nchw: (N, C, M, 1). Returns (N, C, H, W).
    Output dtype follows the input dtype (pass bf16 x for bf16 I/O on v6e)."""
    # TODO(synk): scale > 1 (MaxPool2d downsample + bilinear interpolate back)
    # is not implemented in the kernel; only scale == 1 is supported here.
    assert scale == 1

    N, C, H, W = x_nchw.shape
    M = proxy_nchw.shape[2]
    HW = H * W
    Kc = key_channels

    kern_w, pre_w = _prepare_weights(params, Kc, compute_dtype)

    # ---- proxy path hoisted out of the pixel-tile loop: tiny per-batch
    #      matmuls (M regions) done once, in f32, in the wrapper.
    p = proxy_nchw.reshape(N, C, M).astype(jnp.float32)
    k1 = jnp.maximum(jnp.einsum("kc,ncm->nkm", pre_w["wo1"], p)
                     + pre_w["bo1"][None], 0.0)                    # (N, Kc, M)
    k = jnp.maximum(jnp.einsum("kj,njm->nkm", pre_w["wo2"], k1)
                    + pre_w["bo2"][None], 0.0)                     # (N, Kc, M)
    v = jnp.maximum(jnp.einsum("kc,ncm->nkm", pre_w["wd"], p)
                    + pre_w["bd"][None], 0.0)                      # (N, Kc, M)
    kT = jnp.transpose(k, (0, 2, 1)).astype(compute_dtype)        # (N, M, Kc)
    # Fused value/f_up:  A = (su*wu)^T @ v  ->  out = ReLU(A @ attn + bu).
    A = jnp.einsum("ck,nkm->ncm", pre_w["wu"], v).astype(compute_dtype)  # (N,C,M)

    # ---- pixel tiling (pad H*W to a multiple of the tile if needed).
    target, gran, vmem_limit = _tile_policy(C)
    if block_hw is None:
        block_hw = _choose_hw_tile(HW, target, gran)
    hw_pad = -(-HW // block_hw) * block_hw
    n_t = hw_pad // block_hw

    # Free reshape of contiguous dims -- no NCHW<->NHWC transpose of the big
    # pixel tensor; the kernel consumes/produces channel-first slabs directly.
    x_tok = x_nchw.reshape(N, C, HW)
    if hw_pad != HW:
        x_tok = jnp.pad(x_tok, ((0, 0), (0, 0), (0, hw_pad - HW)))

    weights = (kern_w["wp1"], kern_w["bp1"], kern_w["wp2"], kern_w["bp2"],
               kern_w["bu"])

    in_specs = [
        pl.BlockSpec((1, C, block_hw), lambda b, t: (b, 0, t)),    # x tile
        pl.BlockSpec((1, M, Kc), lambda b, t: (b, 0, 0)),          # kT (per batch)
        pl.BlockSpec((1, C, M), lambda b, t: (b, 0, 0)),           # A  (per batch)
    ] + [pl.BlockSpec(w.shape, lambda b, t: (0, 0)) for w in weights]
    out_spec = pl.BlockSpec((1, C, block_hw), lambda b, t: (b, 0, t))

    # Advisory cost hint for the XLA scheduler.
    flops = 2 * N * hw_pad * (C * Kc + Kc * Kc + Kc * M + C * M)
    bytes_accessed = int(
        x_tok.size * x_tok.dtype.itemsize
        + N * C * hw_pad * x_nchw.dtype.itemsize                   # output
        + kT.size * kT.dtype.itemsize + A.size * A.dtype.itemsize
        + sum(int(w.size) * w.dtype.itemsize for w in weights))

    out_tok = pl.pallas_call(
        _oab_kernel,
        out_shape=jax.ShapeDtypeStruct((N, C, hw_pad), x_nchw.dtype),
        grid_spec=pltpu.PrefetchScalarGridSpec(
            num_scalar_prefetch=0,
            grid=(N, n_t),
            in_specs=in_specs,
            out_specs=out_spec,
        ),
        compiler_params=pltpu.CompilerParams(
            dimension_semantics=("parallel", "parallel"),
            vmem_limit_bytes=int(vmem_limit)),
        cost_estimate=pl.CostEstimate(
            flops=int(flops),
            transcendentals=int(N * hw_pad * M),
            bytes_accessed=bytes_accessed),
    )(x_tok, kT, A, *weights)

    if hw_pad != HW:
        out_tok = out_tok[:, :, :HW]
    return out_tok.reshape(N, C, H, W)


# ----------------------------------------------------------------------------
# Deterministic parameter construction (synthetic; BN folded to scale/bias)
# ----------------------------------------------------------------------------
def make_params(key, in_channels, key_channels, eps=1e-5):
    C, Kc = in_channels, key_channels

    def bn_fold(k, ch):
        kg, kb, km, kv = jax.random.split(k, 4)
        gamma = 1.0 + 0.1 * jax.random.normal(kg, (1, ch), jnp.float32)
        beta = 0.1 * jax.random.normal(kb, (1, ch), jnp.float32)
        mean = 0.1 * jax.random.normal(km, (1, ch), jnp.float32)
        var = jnp.abs(jax.random.normal(kv, (1, ch), jnp.float32)) + 0.5
        s = gamma / jnp.sqrt(var + eps)
        return s, beta - mean * s

    keys = jax.random.split(key, 12)
    wp1 = 0.2 * jax.random.normal(keys[0], (C, Kc), jnp.float32)
    wp2 = 0.2 * jax.random.normal(keys[1], (Kc, Kc), jnp.float32)
    wo1 = 0.2 * jax.random.normal(keys[2], (C, Kc), jnp.float32)
    wo2 = 0.2 * jax.random.normal(keys[3], (Kc, Kc), jnp.float32)
    wd = 0.2 * jax.random.normal(keys[4], (C, Kc), jnp.float32)
    wu = 0.2 * jax.random.normal(keys[5], (Kc, C), jnp.float32)
    sp1, bp1 = bn_fold(keys[6], Kc)
    sp2, bp2 = bn_fold(keys[7], Kc)
    so1, bo1 = bn_fold(keys[8], Kc)
    so2, bo2 = bn_fold(keys[9], Kc)
    sd, bd = bn_fold(keys[10], Kc)
    su, bu = bn_fold(keys[11], C)
    return (wp1, sp1, bp1, wp2, sp2, bp2,
            wo1, so1, bo1, wo2, so2, bo2,
            wd, sd, bd, wu, su, bu)


# ----------------------------------------------------------------------------
# Pure-JAX reference (module semantics, f32) for correctness check
# ----------------------------------------------------------------------------
def reference(x_nchw, proxy_nchw, params, key_channels):
    N, C, H, W = x_nchw.shape
    M = proxy_nchw.shape[2]
    x = jnp.transpose(x_nchw.reshape(N, C, H * W), (0, 2, 1))
    p = jnp.transpose(proxy_nchw.reshape(N, C, M), (0, 2, 1))
    (wp1, sp1, bp1, wp2, sp2, bp2,
     wo1, so1, bo1, wo2, so2, bo2,
     wd, sd, bd, wu, su, bu) = params

    cbr = lambda t, w, s, b: jnp.maximum(t @ w * s + b, 0.0)
    q = cbr(cbr(x, wp1, sp1, bp1), wp2, sp2, bp2)
    k = cbr(cbr(p, wo1, so1, bo1), wo2, so2, bo2)
    v = cbr(p, wd, sd, bd)
    sim = jnp.einsum("nqc,nkc->nqk", q, k) * (key_channels ** -0.5)
    sim = jax.nn.softmax(sim, axis=-1)
    ctx = jnp.einsum("nqk,nkc->nqc", sim, v)
    out = cbr(ctx, wu, su, bu)
    return jnp.transpose(out, (0, 2, 1)).reshape(N, C, H, W)


if __name__ == "__main__":
    N, C, H, W = 2, 4, 16, 16        # input feature map
    Kc = 32                          # key_channels
    M = 8                            # number of proxy (object) regions

    key = jax.random.PRNGKey(0)
    kx, kp, kw = jax.random.split(key, 3)
    x = jax.random.normal(kx, (N, C, H, W), jnp.float32)
    proxy = jax.random.normal(kp, (N, C, M, 1), jnp.float32)
    params = make_params(kw, C, Kc)

    # block_hw=128 exercises the multi-tile pixel grid (HW=256 -> 2 tiles/batch).
    out = object_attention_block(x, proxy, params, key_channels=Kc, scale=1,
                                 block_hw=128)
    out = jax.block_until_ready(out)
    ref = reference(x, proxy, params, Kc)
    assert out.shape == (N, C, H, W)
    # bf16 MXU operands + approx reciprocal vs f32 reference -> loose tolerance.
    err = float(jnp.max(jnp.abs(out - ref)))
    assert err < 5e-2, f"mismatch vs reference: max abs err {err}"

    # Ragged spatial size exercises the padded-tile path (HW=100 has no
    # multiple-of-128 divisor; kernel pads the pixel axis and slices back).
    H2 = W2 = 10
    x2 = jax.random.normal(kx, (N, C, H2, W2), jnp.float32)
    out2 = jax.block_until_ready(
        object_attention_block(x2, proxy, params, key_channels=Kc, scale=1))
    ref2 = reference(x2, proxy, params, Kc)
    err2 = float(jnp.max(jnp.abs(out2 - ref2)))
    assert out2.shape == (N, C, H2, W2)
    assert err2 < 5e-2, f"padded-path mismatch vs reference: max abs err {err2}"

    print("KERNEL_OK")
</pallas_src>

<mosaic_0001>
module attributes {stable_mosaic.version = 11 : i64} {
  func.func @_oab_kernel(%arg0: i32, %arg1: i32, %arg2: memref<1x4x128xf32, #tpu.memory_space<vmem>>, %arg3: memref<1x8x32xbf16, #tpu.memory_space<vmem>>, %arg4: memref<1x4x8xbf16, #tpu.memory_space<vmem>>, %arg5: memref<32x4xbf16, #tpu.memory_space<vmem>>, %arg6: memref<32x1xf32, #tpu.memory_space<vmem>>, %arg7: memref<32x32xbf16, #tpu.memory_space<vmem>>, %arg8: memref<32x1xf32, #tpu.memory_space<vmem>>, %arg9: memref<4x1xf32, #tpu.memory_space<vmem>>, %arg10: memref<1x4x128xf32, #tpu.memory_space<vmem>>) attributes {dimension_semantics = [#tpu.dimension_semantics<parallel>, #tpu.dimension_semantics<parallel>], iteration_bounds = array<i64: 2, 2>, scalar_prefetch = 0 : i64, scratch_operands = 0 : i64, tpu.core_type = #tpu.core_type<tc>, window_params = [{transform_indices = @transform_0, window_bounds = array<i64: 1, 4, 128>}, {transform_indices = @transform_1, window_bounds = array<i64: 1, 8, 32>}, {transform_indices = @transform_2, window_bounds = array<i64: 1, 4, 8>}, {pipeline_mode = #tpu.pipeline_mode<synchronous>, transform_indices = @transform_3, window_bounds = array<i64: 32, 4>}, {pipeline_mode = #tpu.pipeline_mode<synchronous>, transform_indices = @transform_4, window_bounds = array<i64: 32, 1>}, {pipeline_mode = #tpu.pipeline_mode<synchronous>, transform_indices = @transform_5, window_bounds = array<i64: 32, 32>}, {pipeline_mode = #tpu.pipeline_mode<synchronous>, transform_indices = @transform_6, window_bounds = array<i64: 32, 1>}, {pipeline_mode = #tpu.pipeline_mode<synchronous>, transform_indices = @transform_7, window_bounds = array<i64: 4, 1>}, {transform_indices = @transform_8, window_bounds = array<i64: 1, 4, 128>}]} {
    %c0 = arith.constant 0 : index
    %c0_0 = arith.constant 0 : index
    %c0_1 = arith.constant 0 : index
    %0 = vector.load %arg2[%c0, %c0_0, %c0_1] : memref<1x4x128xf32, #tpu.memory_space<vmem>>, vector<1x4x128xf32>
    %1 = vector.shape_cast %0 : vector<1x4x128xf32> to vector<4x128xf32>
    %2 = arith.truncf %1 : vector<4x128xf32> to vector<4x128xbf16>
    %c0_2 = arith.constant 0 : index
    %c0_3 = arith.constant 0 : index
    %3 = vector.load %arg5[%c0_2, %c0_3] : memref<32x4xbf16, #tpu.memory_space<vmem>>, vector<32x4xbf16>
    %cst = arith.constant dense<0.000000e+00> : vector<32x128xf32>
    %4 = tpu.matmul %3, %2, %cst {dimension_numbers = #tpu.dot_dimension_numbers<[1], [0], [0], [1], [0, 0, 1, 1], [], []>} : vector<32x4xbf16>, vector<4x128xbf16>, vector<32x128xf32> -> vector<32x128xf32>
    %c0_4 = arith.constant 0 : index
    %c0_5 = arith.constant 0 : index
    %5 = vector.load %arg6[%c0_4, %c0_5] : memref<32x1xf32, #tpu.memory_space<vmem>>, vector<32x1xf32>
    %6 = vector.broadcast %5 : vector<32x1xf32> to vector<32x128xf32>
    %7 = arith.addf %4, %6 : vector<32x128xf32>
    %cst_6 = arith.constant 0.000000e+00 : f32
    %8 = vector.broadcast %cst_6 : f32 to vector<32x128xf32>
    %9 = arith.maximumf %7, %8 : vector<32x128xf32>
    %c0_7 = arith.constant 0 : index
    %c0_8 = arith.constant 0 : index
    %10 = vector.load %arg7[%c0_7, %c0_8] : memref<32x32xbf16, #tpu.memory_space<vmem>>, vector<32x32xbf16>
    %11 = arith.truncf %9 : vector<32x128xf32> to vector<32x128xbf16>
    %cst_9 = arith.constant dense<0.000000e+00> : vector<32x128xf32>
    %12 = tpu.matmul %10, %11, %cst_9 {dimension_numbers = #tpu.dot_dimension_numbers<[1], [0], [0], [1], [0, 0, 1, 1], [], []>} : vector<32x32xbf16>, vector<32x128xbf16>, vector<32x128xf32> -> vector<32x128xf32>
    %c0_10 = arith.constant 0 : index
    %c0_11 = arith.constant 0 : index
    %13 = vector.load %arg8[%c0_10, %c0_11] : memref<32x1xf32, #tpu.memory_space<vmem>>, vector<32x1xf32>
    %14 = vector.broadcast %13 : vector<32x1xf32> to vector<32x128xf32>
    %15 = arith.addf %12, %14 : vector<32x128xf32>
    %cst_12 = arith.constant 0.000000e+00 : f32
    %16 = vector.broadcast %cst_12 : f32 to vector<32x128xf32>
    %17 = arith.maximumf %15, %16 : vector<32x128xf32>
    %c0_13 = arith.constant 0 : index
    %c0_14 = arith.constant 0 : index
    %c0_15 = arith.constant 0 : index
    %18 = vector.load %arg3[%c0_13, %c0_14, %c0_15] : memref<1x8x32xbf16, #tpu.memory_space<vmem>>, vector<1x8x32xbf16>
    %19 = vector.shape_cast %18 : vector<1x8x32xbf16> to vector<8x32xbf16>
    %20 = arith.truncf %17 : vector<32x128xf32> to vector<32x128xbf16>
    %cst_16 = arith.constant dense<0.000000e+00> : vector<8x128xf32>
    %21 = tpu.matmul %19, %20, %cst_16 {dimension_numbers = #tpu.dot_dimension_numbers<[1], [0], [0], [1], [0, 0, 1, 1], [], []>} : vector<8x32xbf16>, vector<32x128xbf16>, vector<8x128xf32> -> vector<8x128xf32>
    %cst_17 = arith.constant dense<0xFF800000> : vector<128xf32>
    %22 = vector.multi_reduction <maximumf>, %21, %cst_17 [0] : vector<8x128xf32> to vector<128xf32>
    %23 = vector.shape_cast %22 : vector<128xf32> to vector<1x128xf32>
    %24 = vector.broadcast %23 : vector<1x128xf32> to vector<8x128xf32>
    %25 = arith.subf %21, %24 : vector<8x128xf32>
    %26 = math.exp %25 : vector<8x128xf32>
    %cst_18 = arith.constant dense<0.000000e+00> : vector<128xf32>
    %27 = vector.multi_reduction <add>, %26, %cst_18 [0] : vector<8x128xf32> to vector<128xf32>
    %28 = vector.shape_cast %27 : vector<128xf32> to vector<1x128xf32>
    %29 = tpu.reciprocal %28 {approx = true} : vector<1x128xf32> -> vector<1x128xf32>
    %30 = vector.broadcast %29 : vector<1x128xf32> to vector<8x128xf32>
    %31 = arith.mulf %26, %30 : vector<8x128xf32>
    %c0_19 = arith.constant 0 : index
    %c0_20 = arith.constant 0 : index
    %c0_21 = arith.constant 0 : index
    %32 = vector.load %arg4[%c0_19, %c0_20, %c0_21] : memref<1x4x8xbf16, #tpu.memory_space<vmem>>, vector<1x4x8xbf16>
    %33 = vector.shape_cast %32 : vector<1x4x8xbf16> to vector<4x8xbf16>
    %34 = arith.truncf %31 : vector<8x128xf32> to vector<8x128xbf16>
    %cst_22 = arith.constant dense<0.000000e+00> : vector<4x128xf32>
    %35 = tpu.matmul %33, %34, %cst_22 {dimension_numbers = #tpu.dot_dimension_numbers<[1], [0], [0], [1], [0, 0, 1, 1], [], []>} : vector<4x8xbf16>, vector<8x128xbf16>, vector<4x128xf32> -> vector<4x128xf32>
    %c0_23 = arith.constant 0 : index
    %c0_24 = arith.constant 0 : index
    %36 = vector.load %arg9[%c0_23, %c0_24] : memref<4x1xf32, #tpu.memory_space<vmem>>, vector<4x1xf32>
    %37 = vector.broadcast %36 : vector<4x1xf32> to vector<4x128xf32>
    %38 = arith.addf %35, %37 : vector<4x128xf32>
    %cst_25 = arith.constant 0.000000e+00 : f32
    %39 = vector.broadcast %cst_25 : f32 to vector<4x128xf32>
    %40 = arith.maximumf %38, %39 : vector<4x128xf32>
    %c0_26 = arith.constant 0 : index
    %c0_27 = arith.constant 0 : index
    %c0_28 = arith.constant 0 : index
    %41 = vector.load %arg10[%c0_26, %c0_27, %c0_28] : memref<1x4x128xf32, #tpu.memory_space<vmem>>, vector<1x4x128xf32>
    %42 = vector.shape_cast %41 : vector<1x4x128xf32> to vector<4x128xf32>
    %43 = vector.shape_cast %40 : vector<4x128xf32> to vector<1x4x128xf32>
    tpu.vector_store %arg10[%c0_26, %c0_27, %c0_28], %43 {strides = array<i32>} : memref<1x4x128xf32, #tpu.memory_space<vmem>>, vector<1x4x128xf32>,
    return
  }
  func.func @transform_0(%arg0: i32, %arg1: i32) -> (i32, i32, i32) {
    %c0_i32 = arith.constant 0 : i32
    %c0_i32_0 = arith.constant 0 : i32
    return %arg0, %c0_i32, %arg1 : i32, i32, i32
  }
  func.func @transform_1(%arg0: i32, %arg1: i32) -> (i32, i32, i32) {
    %c0_i32 = arith.constant 0 : i32
    %c0_i32_0 = arith.constant 0 : i32
    %c0_i32_1 = arith.constant 0 : i32
    return %arg0, %c0_i32, %c0_i32_0 : i32, i32, i32
  }
  func.func @transform_2(%arg0: i32, %arg1: i32) -> (i32, i32, i32) {
    %c0_i32 = arith.constant 0 : i32
    %c0_i32_0 = arith.constant 0 : i32
    %c0_i32_1 = arith.constant 0 : i32
    return %arg0, %c0_i32, %c0_i32_0 : i32, i32, i32
  }
  func.func @transform_3(%arg0: i32, %arg1: i32) -> (i32, i32) {
    %c0_i32 = arith.constant 0 : i32
    %c0_i32_0 = arith.constant 0 : i32
    %c0_i32_1 = arith.constant 0 : i32
    return %c0_i32, %c0_i32_0 : i32, i32
  }
  func.func @transform_4(%arg0: i32, %arg1: i32) -> (i32, i32) {
    %c0_i32 = arith.constant 0 : i32
    %c0_i32_0 = arith.constant 0 : i32
    %c0_i32_1 = arith.constant 0 : i32
    return %c0_i32, %c0_i32_0 : i32, i32
  }
  func.func @transform_5(%arg0: i32, %arg1: i32) -> (i32, i32) {
    %c0_i32 = arith.constant 0 : i32
    %c0_i32_0 = arith.constant 0 : i32
    %c0_i32_1 = arith.constant 0 : i32
    return %c0_i32, %c0_i32_0 : i32, i32
  }
  func.func @transform_6(%arg0: i32, %arg1: i32) -> (i32, i32) {
    %c0_i32 = arith.constant 0 : i32
    %c0_i32_0 = arith.constant 0 : i32
    %c0_i32_1 = arith.constant 0 : i32
    return %c0_i32, %c0_i32_0 : i32, i32
  }
  func.func @transform_7(%arg0: i32, %arg1: i32) -> (i32, i32) {
    %c0_i32 = arith.constant 0 : i32
    %c0_i32_0 = arith.constant 0 : i32
    %c0_i32_1 = arith.constant 0 : i32
    return %c0_i32, %c0_i32_0 : i32, i32
  }
  func.func @transform_8(%arg0: i32, %arg1: i32) -> (i32, i32, i32) {
    %c0_i32 = arith.constant 0 : i32
    %c0_i32_0 = arith.constant 0 : i32
    return %arg0, %c0_i32, %arg1 : i32, i32, i32
  }
}

</mosaic_0001>

<bundles_post_ra>
// kernel: tpu_custom_call.1
= control target key start
LH: loop header
LB: loop body
LE: loop exit
PB: predicated region body
PF: predicated region fallthrough
CT: control target
= control target key end

     0   :  { %s2166_s0 = inlined_call_operand.hbm [shape: f32[2,4,256], index: 0, kind: input, shape index: {}]   ;;  %s2167_s1 = inlined_call_operand.hbm [shape: bf16[2,8,32], index: 1, kind: input, shape index: {}]   ;;  %s2168_s2 = inlined_call_operand.hbm [shape: bf16[2,4,8], index: 2, kind: input, shape index: {}]   ;;  %s2169_s3 = inlined_call_operand.hbm [shape: bf16[32,4], index: 3, kind: input, shape index: {}]   ;;  %s2170_s4 = inlined_call_operand.hbm [shape: f32[32,1], index: 4, kind: input, shape index: {}]   ;;  %s2171_s5 = inlined_call_operand.hbm [shape: bf16[32,32], index: 5, kind: input, shape index: {}]   ;;  %s2172_s6 = inlined_call_operand.hbm [shape: f32[32,1], index: 6, kind: input, shape index: {}]   ;;  %s2173_s7 = inlined_call_operand.hbm [shape: f32[4,1], index: 7, kind: input, shape index: {}]   ;;  %s2174_s8 = inlined_call_operand.hbm [shape: f32[2,4,256], index: 8, kind: output, shape index: {}]  }
   0x1   :  { %2199 = sst [smem:[#allocation32_spill]] %s2166_s0 }
   0x2   :  { %2200 = sst [smem:[#allocation33_spill]] %s2167_s1 }
   0x3   :  { %2201 = sst [smem:[#allocation34_spill]] %s2168_s2 }
   0x4   :  { %2202 = sst [smem:[#allocation35_spill]] %s2169_s3 }
   0x5   :  { %2203 = sst [smem:[#allocation36_spill]] %s2170_s4 }
   0x6   :  { %2204 = sst [smem:[#allocation37_spill]] %s2171_s5 }
   0x7   :  { %2205 = sst [smem:[#allocation38_spill]] %s2172_s6 }
   0x8   :  { %2206 = sst [smem:[#allocation39_spill]] %s2173_s7 }
   0x9   :  { %2207 = sst [smem:[#allocation40_spill]] %s2174_s8 }
   0xa   :  { %13 = vsyncpa [#allocation3], 0 }
   0xb   :  { %15 = vsyncpa [#allocation3 + $0x1], 0 }
   0xc   :  { %16 = vsyncpa [#allocation6], 0 }
   0xd   :  { %18 = vsyncpa [#allocation6 + $0x1], 0 }
   0xe   :  { %19 = vsyncpa [#allocation9], 0 }
   0xf   :  { %20 = vsyncpa [#allocation12], 0 }
  0x10   :  { %21 = vsyncpa [#allocation15], 0 }
  0x11   :  { %22 = vsyncpa [#allocation4], 0 }
  0x12   :  { %24 = vsyncpa [#allocation4 + $0x1], 0  ;;  %s1692_s27 = smov 0   ;;  %s1694_s28 = smov 0  }
  0x13   :  { %s1696_s29 = smov 0   ;;  %s1698_s30 = smov 0  }
  0x14   :  { %s1700_s9 = smov 0   ;;  %s1702_s10 = smov 0  }
  0x15   :  { %s1704_s11 = smov 0   ;;  %s1706_s12 = smov 0  }
  0x16   :  { %s1708_s13 = smov 0   ;;  %s1710_s14 = smov 0  }
  0x17   :  { %s1712_s15 = smov 0  }
  0x18 LB: > { %2208 = sst [smem:[#allocation23_spill]] %s1601_s30  ;;  %s1748_s16 = sadd.s32 4294967295, %s1629_s15   ;;  %s1629_s15 = sphi %s1712_s15, %s30_s15   ;;  %s1625_s14 = sphi %s1710_s14, %s2275_s14   ;;  %s1621_s13 = sphi %s1708_s13, %s2274_s13   ;;  %s1617_s12 = sphi %s1706_s12, %s2273_s12   ;;  %s1613_s11 = sphi %s1704_s11, %s2272_s11   ;;  %s1609_s10 = sphi %s1702_s10, %s2271_s10   ;;  %s1605_s9 = sphi %s1700_s9, %s2270_s9   ;;  %s1601_s30 = sphi %s1698_s30, %s2269_s30   ;;  %s1597_s29 = sphi %s1696_s29, %s2268_s29   ;;  %s1593_s28 = sphi %s1694_s28, %s2267_s28   ;;  %s1589_s27 = sphi %s1692_s27, %s2266_s27  }
  0x19   : > { %2209 = sst [smem:[#allocation24_spill]] %s1613_s11  ;;  %p1001_p0 = scmp.ge.s32.totalorder %s1629_s15, 1 }
  0x1a   : > { %2210 = sst [smem:[#allocation25_spill]] %s1617_s12  ;;  %p2176_p1 = scmp.eq.s32.totalorder %s1748_s16, 0 }
  0x1b   : > { %2211 = sst [smem:[#allocation26_spill]] %s1748_s16  ;;  %p260_p2 = scmp.lt.s32.totalorder %s1629_s15, 5 }
  0x1c   : > { %s1631_s18 = smov [#allocation8]   ;;  %s1632_s21 = smov [#allocation11]  }
  0x1d   : > { %p1753_p3 = pnand %p1001_p0, %p260_p2  ;;  %s272_s19 = sshll.u32 %s1631_s18, 4  ;;  %s273_s19 = int_to_ptr.vmem [resolvable:$true] %s272_s19 }
  0x1e   : > { %s298_s22 = sshll.u32 %s1632_s21, 4  ;;  %s2215_s3 = sld [smem:[#allocation35_spill]]  ;;  %s1765_s22 = int_to_ptr.vmem [resolvable:$true] %s298_s22 }
  0x1f   : > { %s2212_s17 = scalar_select %p1753_p3, 1, 0 }
  0x20   : > { %p1109_p4 = pneg %p1753_p3 }
  0x21   : > { %2213 = sst [smem:[#allocation27_spill]] %s2212_s17 }
  0x22   : > { %p1761_p5 = pnand %p1109_p4, %p2176_p1 }
  0x24   : > { %s2214_s20 = scalar_select %p1761_p5, 1, 0 }
  0x25   : > { %s1261_s25 = scalar_lea.hbm %s2215_s3, 256  ;;  %p1775_p7 = pneg %p1761_p5 }
  0x26   : > { %p1262_p6 = scmp.ne.s32.totalorder %s2215_s3, %s1261_s25  ;;  %p1268_p10 = scmp.lt.u32.totalorder %s1261_s25, %s2215_s3 }
  0x28   : > { %p1264_p8 = pnand %p1775_p7, %p1262_p6 }
  0x2a   : > { %p1265_p9 = pneg %p1264_p8 }
  0x2c   : > { %p1270_p11 = pnand %p1268_p10, %p1265_p9 }
  0x2e   : > { %1273 = shalt.err (!%p1270_p11)
}
  0x2f   : > { %s1274_s23 = scalar_lea.vmem %s273_s19, 256  ;;  %p1282_p2 = scmp.lt.s32.totalorder %s273_s19, %s273_s19 }
  0x30   : > { %p1275_p12 = scmp.ne.s32.totalorder %s273_s19, %s1274_s23  ;;  %p1283_p4 = scmp.lt.s32.totalorder %s1274_s23, %s1274_s23 }
  0x32   : > { %p1277_p13 = pnand %p1275_p12, %p1775_p7  ;;  %p1284_p1 = por %p1283_p4, %p1282_p2 }
  0x34   : > { %p1278_p0 = pneg %p1277_p13 }
  0x36   : > { %p1285_p3 = pnand %p1284_p1, %p1278_p0 }
  0x38   : > { %1288 = shalt.err (!%p1285_p3)
}
  0x39   : > { %s1633_s8 = smov 64   ;;  %s1634_s24 = smov 4  }
  0x3a   : > { %1112 = dma.hbm_to_vmem [thread:$0]  (!%p1761_p5), %s2215_s3, 256, %s273_s19, [#allocation9], %s1633_s8, %s1633_s8, %s1634_s24  }
  0x3b   : > { %s2217_s5 = sld [smem:[#allocation37_spill]] }
  0x41   : > { %s1289_s12 = scalar_lea.hbm %s2217_s5, 256 }
  0x42   : > { %p1290_p6 = scmp.ne.s32.totalorder %s2217_s5, %s1289_s12  ;;  %p1296_p8 = scmp.lt.u32.totalorder %s1289_s12, %s2217_s5 }
  0x44   : > { %p1292_p1 = pnand %p1290_p6, %p1775_p7 }
  0x46   : > { %p1293_p3 = pneg %p1292_p1 }
  0x48   : > { %p1298_p9 = pnand %p1296_p8, %p1293_p3 }
  0x4a   : > { %1301 = shalt.err (!%p1298_p9)
}
  0x4b   : > { %s1302_s19 = scalar_lea.vmem %s1765_s22, 256  ;;  %p1310_p13 = scmp.lt.s32.totalorder %s1765_s22, %s1765_s22 }
  0x4c   : > { %p1303_p10 = scmp.ne.s32.totalorder %s1765_s22, %s1302_s19  ;;  %p1311_p0 = scmp.lt.s32.totalorder %s1302_s19, %s1302_s19 }
  0x4e   : > { %p1305_p11 = pnand %p1303_p10, %p1775_p7  ;;  %p1312_p2 = por %p1311_p0, %p1310_p13 }
  0x50   : > { %p1306_p12 = pneg %p1305_p11 }
  0x52   : > { %p1313_p4 = pnand %p1312_p2, %p1306_p12 }
  0x54   : > { %1316 = shalt.err (!%p1313_p4)
}
  0x55   : > { %1118 = dma.hbm_to_vmem [thread:$0]  (!%p1761_p5), %s2217_s5, 256, %s1765_s22, [#allocation12], %s1633_s8, %s1633_s8, %s1634_s24  }
  0x56   : > { %p2182_p6 = scmp.eq.s32.totalorder %s1629_s15, 0  ;;  %p84_p1 = scmp.ne.s32.totalorder %s1597_s29, %s1593_s28 }
  0x57   : > { %p90_p3 = scmp.ne.s32.totalorder %s1593_s28, %s1589_s27  ;;  %p2181_p8 = scmp.lt.s32.totalorder %s1629_s15, 4 }
  0x58   : > { %s356_s17 = sand.u32 1, %s1629_s15   ;;  %p86_p9 = por %p84_p1, %p2182_p6 }
  0x59   : > { %p2218_p10 = scmp.eq.s32.totalorder %s1748_s16, 0  ;;  %s358_s25 = sand.u32 1, %s1597_s29  }
  0x5a   : > { %s1011_s26 = sshll.u32 %s358_s25, 2  ;;  %s1012_s21 = sshll.u32 %s1625_s14, 6 }
  0x5b   : > { %p1826_p11 = por %p90_p3, %p2218_p10  ;;  %s2221_s1 = sld [smem:[#allocation33_spill]] }
  0x5c   : > { %s360_s27 = scalar_lea.vmem [#allocation5], %s1011_s26  ;;  %p1839_p12 = pnand %p2181_p8, %p86_p9 }
  0x5d   : > { %s2219_s11 = scalar_select %p1826_p11, 1, 0 }
  0x5e   : > { %s367_s8 = sshll.u32 %s360_s27, 4  ;;  %s1845_s0 = sshll.u32 %s358_s25, 1  ;;  %s1843_s8 = int_to_ptr.vmem [resolvable:$true] %s367_s8 }
  0x5f   : > { %2220 = sst [smem:[#allocation28_spill]] %s2219_s11  ;;  %s1847_s2 = scalar_lea.sflag [#allocation6], %s356_s17 }
  0x60   : > { %s2222_s24 = scalar_select %p1839_p12, 1, 0 }
  0x61   : > { %s1835_s22 = scalar_lea.hbm %s2221_s1, %s1012_s21  ;;  %p2186_p0 = pneg %p1839_p12 }
  0x62   : > { %s1317_s21 = scalar_lea.hbm %s1835_s22, 64  ;;  %s1322_s19 = scalar_lea.hbm %s2221_s1, 128 }
  0x63   : > { %p1318_p13 = scmp.ne.s32.totalorder %s1835_s22, %s1317_s21  ;;  %p1323_p1 = scmp.lt.u32.totalorder %s1835_s22, %s2221_s1 }
  0x64   : > { %p1324_p3 = scmp.lt.u32.totalorder %s1322_s19, %s1317_s21  ;;  %p1326_p10 = scmp.lt.u32.totalorder %s1317_s21, %s1835_s22 }
  0x65   : > { %p1320_p2 = pnand %p2186_p0, %p1318_p13 }
  0x66   : > { %p1325_p9 = por %p1324_p3, %p1323_p1 }
  0x67   : > { %p1321_p4 = pneg %p1320_p2 }
  0x68   : > { %p1327_p8 = por %p1326_p10, %p1325_p9 }
  0x6a   : > { %p1328_p6 = pnand %p1327_p8, %p1321_p4 }
  0x6c   : > { %1331 = shalt.err (!%p1328_p6)
}
  0x6d   : > { %s1332_s17 = scalar_lea.vmem %s1843_s8, 64  ;;  %s1635_s25 = smov [#allocation5]  }
  0x6e   : > { %p1333_p13 = scmp.ne.s32.totalorder %s1843_s8, %s1332_s17  ;;  %s1337_s26 = sshll.u32 %s1635_s25, 4  ;;  %s1338_s26 = int_to_ptr.vmem [resolvable:$false] %s1337_s26 }
  0x6f   : > { %s1339_s12 = scalar_lea.vmem %s1338_s26, 128  ;;  %p1340_p5 = scmp.lt.s32.totalorder %s1843_s8, %s1338_s26 }
  0x70   : > { %p1335_p2 = pnand %p1333_p13, %p2186_p0  ;;  %p1341_p1 = scmp.lt.s32.totalorder %s1339_s12, %s1332_s17 }
  0x72   : > { %p1336_p11 = pneg %p1335_p2  ;;  %p1342_p3 = por %p1341_p1, %p1340_p5 }
  0x74   : > { %p1343_p9 = pnand %p1342_p3, %p1336_p11 }
  0x76   : > { %1346 = shalt.err (!%p1343_p9)
}
  0x77   : > { %1131 = dma.hbm_to_vmem [thread:$0]  (!%p1839_p12), %s1835_s22, 64, %s1843_s8, %s1847_s2  }
  0x78   : > { %s1636_s21 = smov [#allocation10]   ;;  %s2223_s4 = sld [smem:[#allocation36_spill]] }
  0x79   : > { %s285_s23 = sshll.u32 %s1636_s21, 4  ;;  %s286_s23 = int_to_ptr.vmem [resolvable:$true] %s285_s23 }
  0x7e   : > { %s1347_s25 = scalar_lea.hbm %s2223_s4, 512 }
  0x7f   : > { %p1348_p5 = scmp.ne.s32.totalorder %s2223_s4, %s1347_s25  ;;  %p1354_p11 = scmp.lt.u32.totalorder %s1347_s25, %s2223_s4 }
  0x81   : > { %p1350_p6 = pnand %p1348_p5, %p1775_p7 }
  0x83   : > { %p1351_p8 = pneg %p1350_p6 }
  0x85   : > { %p1356_p4 = pnand %p1354_p11, %p1351_p8 }
  0x87   : > { %1359 = shalt.err (!%p1356_p4)
}
  0x88   : > { %s1360_s22 = scalar_lea.vmem %s286_s23, 512  ;;  %p1368_p1 = scmp.lt.s32.totalorder %s286_s23, %s286_s23 }
  0x89   : > { %p1361_p10 = scmp.ne.s32.totalorder %s286_s23, %s1360_s22  ;;  %p1369_p3 = scmp.lt.s32.totalorder %s1360_s22, %s1360_s22 }
  0x8b   : > { %p1363_p13 = pnand %p1361_p10, %p1775_p7  ;;  %p1370_p9 = por %p1369_p3, %p1368_p1 }
  0x8d   : > { %p1364_p2 = pneg %p1363_p13 }
  0x8f   : > { %p1371_p0 = pnand %p1370_p9, %p1364_p2 }
  0x91   : > { %1374 = shalt.err (!%p1371_p0)
}
  0x92   : > { %s1637_s1 = smov 128   ;;  %s1638_s8 = smov 8  }
  0x93   : > { %p2224_p5 = scmp.ne.s32.totalorder %s2214_s20, 0  ;;  %s1639_s27 = smov [#allocation13]  }
  0x94   : > { %s311_s25 = sshll.u32 %s1639_s27, 4  ;;  %s1640_s26 = smov [#allocation14]   ;;  %s312_s25 = int_to_ptr.vmem [resolvable:$true] %s311_s25 }
  0x95   : > { %1115 = dma.hbm_to_vmem [thread:$0]  (!%p2224_p5), %s2223_s4, 512, %s286_s23, [#allocation9], %s1637_s1, %s1637_s1, %s1638_s8  }
  0x96   : > { %s325_s17 = sshll.u32 %s1640_s26, 4  ;;  %s2225_s6 = sld [smem:[#allocation38_spill]]  ;;  %s1893_s17 = int_to_ptr.vmem [resolvable:$true] %s325_s17 }
  0x9c   : > { %s1375_s3 = scalar_lea.hbm %s2225_s6, 512 }
  0x9d   : > { %p1376_p0 = scmp.ne.s32.totalorder %s2225_s6, %s1375_s3  ;;  %p1382_p11 = scmp.lt.u32.totalorder %s1375_s3, %s2225_s6 }
  0x9f   : > { %p1378_p6 = pnand %p1376_p0, %p1775_p7 }
  0xa1   : > { %p1379_p8 = pneg %p1378_p6 }
  0xa3   : > { %p1384_p4 = pnand %p1382_p11, %p1379_p8 }
  0xa5   : > { %1387 = shalt.err (!%p1384_p4)
}
  0xa6   : > { %s1388_s19 = scalar_lea.vmem %s312_s25, 512  ;;  %p1396_p1 = scmp.lt.s32.totalorder %s312_s25, %s312_s25 }
  0xa7   : > { %p1389_p10 = scmp.ne.s32.totalorder %s312_s25, %s1388_s19  ;;  %p1397_p3 = scmp.lt.s32.totalorder %s1388_s19, %s1388_s19 }
  0xa9   : > { %p1391_p13 = pnand %p1389_p10, %p1775_p7  ;;  %p1398_p9 = por %p1397_p3, %p1396_p1 }
  0xab   : > { %p1392_p2 = pneg %p1391_p13 }
  0xad   : > { %p1399_p12 = pnand %p1398_p9, %p1392_p2 }
  0xaf   : > { %1402 = shalt.err (!%p1399_p12)
}
  0xb0   : > { %1121 = dma.hbm_to_vmem [thread:$0]  (!%p2224_p5), %s2225_s6, 512, %s312_s25, [#allocation12], %s1637_s1, %s1637_s1, %s1638_s8  }
  0xb1   : > { %s2226_s7 = sld [smem:[#allocation39_spill]] }
  0xb7   : > { %s1403_s26 = scalar_lea.hbm %s2226_s7, 64 }
  0xb8   : > { %p1404_p0 = scmp.ne.s32.totalorder %s2226_s7, %s1403_s26  ;;  %p1410_p12 = scmp.lt.u32.totalorder %s1403_s26, %s2226_s7 }
  0xba   : > { %p1406_p6 = pnand %p1404_p0, %p1775_p7 }
  0xbc   : > { %p1407_p8 = pneg %p1406_p6 }
  0xbe   : > { %p1412_p11 = pnand %p1410_p12, %p1407_p8 }
  0xc0   : > { %1415 = shalt.err (!%p1412_p11)
}
  0xc1   : > { %s1416_s1 = scalar_lea.vmem %s1893_s17, 64  ;;  %p1424_p2 = scmp.lt.s32.totalorder %s1893_s17, %s1893_s17 }
  0xc2   : > { %p1417_p4 = scmp.ne.s32.totalorder %s1893_s17, %s1416_s1  ;;  %p1425_p1 = scmp.lt.s32.totalorder %s1416_s1, %s1416_s1 }
  0xc4   : > { %p1419_p10 = pnand %p1417_p4, %p1775_p7  ;;  %p1426_p3 = por %p1425_p1, %p1424_p2 }
  0xc6   : > { %p1420_p13 = pneg %p1419_p10 }
  0xc8   : > { %p1427_p9 = pnand %p1426_p3, %p1420_p13 }
  0xca   : > { %1430 = shalt.err (!%p1427_p9)
}
  0xcb   : > { %1124 = dma.hbm_to_vmem [thread:$0]  (!%p2224_p5), %s2226_s7, 64, %s1893_s17, [#allocation15]  }
  0xcc   : > { %s1000_s18 = sadd.s32 4294967294, %s1629_s15   ;;  %s39_s20 = sadd.s32 1, %s1621_s13 }
  0xcd   : > { %p40_p7 = scmp.ge.s32.totalorder %s39_s20, 2  ;;  %s42_s19 = sadd.s32 1, %s1625_s14 }
  0xce   : > { %s51_s5 = sadd.s32 1, %s1609_s10  ;;  %p58_p0 = scmp.ne.s32.totalorder %s1609_s10, %s1605_s9 }
  0xcf   : > { %s2277_s20 = smov (%p40_p7, %s39_s20), 0  ;;  %s2279_s19 = smov (!%p40_p7, %s42_s19), %s1625_s14 }
  0xd0   : > { %2227 = sst [smem:[#allocation29_spill]] %s2277_s20  ;;  %s47_s11 = ssub.s32 %s1621_s13, %s2277_s20 }
  0xd1   : > { %p2228_p6 = scmp.eq.s32.totalorder %s1629_s15, 0  ;;  %p44_p5 = scmp.ge.s32.totalorder %s2279_s19, 2 }
  0xd2   : > { %p64_p12 = scmp.ne.s32.totalorder %s1605_s9, %s1601_s30  ;;  %p247_p11 = scmp.eq.s32.totalorder %s1748_s16, 3 }
  0xd3   : > { %p1949_p8 = por %p2228_p6, %p58_p0  ;;  %p253_p4 = scmp.eq.s32.totalorder %s1000_s18, 3 }
  0xd4   : > { %s2281_s19 = smov (%p44_p5, %s2279_s19), 0  ;;  %p2231_p10 = scmp.eq.s32.totalorder %s1748_s16, 0 }
  0xd5   : > { %2230 = sst [smem:[#allocation30_spill]] %s2281_s19  ;;  %p1964_p2 = por %p247_p11, %p58_p0 }
  0xd6   : > { %p1960_p13 = por %p2231_p10, %p64_p12  ;;  %s46_s26 = ssub.s32 %s1625_s14, %s2281_s19 }
  0xd7   : > { %s2233_s27 = scalar_select %p1964_p2, 1, 0 }
  0xd8   : > { %s2232_s3 = scalar_select %p1960_p13, 1, 0 }
  0xd9   : > { %p1970_p1 = por %p253_p4, %p64_p12  ;;  %s48_s22 = sor.u32 %s47_s11, %s46_s26 }
  0xda   : > { %p75_p3 = scmp.eq.s32.totalorder %s46_s26, 0  ;;  %p49_p9 = scmp.eq.s32.totalorder %s48_s22, 0 }
  0xdb   : > { %s2234_s12 = scalar_select %p1970_p1, 1, 0 }
  0xdc   : > { %s336_s21 = sand.u32 1, %s1609_s10   ;;  %s2236_s23 = sadd.s32 1, %s1597_s29 }
  0xdd   : > { %2235 = sst [smem:[#allocation31_spill]] %s2234_s12  ;;  %s1008_s25 = sshll.u32 %s336_s21, 2 }
  0xde   : > { %s1978_s1 = scalar_select %p75_p3, %s1597_s29, %s2236_s23  }
  0xdf   : > { %s1981_s8 = scalar_select %p49_p9, %s1609_s10, %s51_s5  }
  0xe0   : > { %s1009_s18 = sshll.u32 %s1625_s14, 1  ;;  %s340_s6 = scalar_lea.vmem [#allocation2], %s1008_s25 }
  0xe1   : > { %s345_s4 = sadd.s32 %s1621_s13, %s1009_s18  ;;  %s349_s7 = sshll.u32 %s340_s6, 4  ;;  %s1985_s7 = int_to_ptr.vmem [resolvable:$true] %s349_s7 }
  0xe2   : > { %s1010_s19 = sshll.u32 %s345_s4, 6  ;;  %s2237_s30 = sld [smem:[#allocation32_spill]] }
  0xe3   : > { %p2239_p7 = scmp.lt.s32.totalorder %s1629_s15, 4  ;;  %s1014_s4 = sshll.u32 %s1625_s14, 5 }
  0xe4   : > { %s2241_s22 = sld [smem:[#allocation34_spill]] }
  0xe5   : > { %p1996_p0 = pnand %p2239_p7, %p1949_p8 }
  0xe7   : > { %p1433_p5 = pneg %p1996_p0 }
  0xe8   : > { %s2238_s16 = smov %s2237_s30  ;;  %s1990_s11 = scalar_lea.hbm %s2237_s30, %s1010_s19 }
  0xe9   : > { %s337_s30 = scalar_lea.sflag [#allocation3], %s336_s21  ;;  %s1431_s20 = scalar_lea.hbm %s1990_s11, 64 }
  0xea   : > { %s2004_s23 = scalar_lea.hbm %s2241_s22, %s1014_s4  ;;  %p1432_p6 = scmp.ne.s32.totalorder %s1990_s11, %s1431_s20 }
  0xeb   : > { %s1436_s12 = scalar_lea.hbm %s2238_s16, 256  ;;  %p1437_p11 = scmp.lt.u32.totalorder %s1990_s11, %s2238_s16 }
  0xec   : > { %p1434_p12 = pnand %p1433_p5, %p1432_p6  ;;  %p1438_p4 = scmp.lt.u32.totalorder %s1436_s12, %s1431_s20 }
  0xed   : > { %p1440_p3 = scmp.lt.u32.totalorder %s1431_s20, %s1990_s11 }
  0xee   : > { %p1435_p8 = pneg %p1434_p12  ;;  %p1439_p10 = por %p1438_p4, %p1437_p11 }
  0xf0   : > { %p1441_p9 = por %p1440_p3, %p1439_p10 }
  0xf2   : > { %p1442_p7 = pnand %p1441_p9, %p1435_p8 }
  0xf4   : > { %1445 = shalt.err (!%p1442_p7)
}
  0xf5   : > { %s1446_s21 = scalar_lea.vmem %s1985_s7, 64  ;;  %s1641_s4 = smov [#allocation2]  }
  0xf6   : > { %p1447_p6 = scmp.ne.s32.totalorder %s1985_s7, %s1446_s21  ;;  %s1451_s6 = sshll.u32 %s1641_s4, 4  ;;  %s1452_s6 = int_to_ptr.vmem [resolvable:$false] %s1451_s6 }
  0xf7   : > { %s1453_s26 = scalar_lea.vmem %s1452_s6, 128  ;;  %p1454_p2 = scmp.lt.s32.totalorder %s1985_s7, %s1452_s6 }
  0xf8   : > { %p1449_p12 = pnand %p1447_p6, %p1433_p5  ;;  %p1455_p11 = scmp.lt.s32.totalorder %s1453_s26, %s1446_s21 }
  0xfa   : > { %p1450_p1 = pneg %p1449_p12  ;;  %p1456_p4 = por %p1455_p11, %p1454_p2 }
  0xfc   : > { %p1457_p10 = pnand %p1456_p4, %p1450_p1 }
  0xfe   : > { %1460 = shalt.err (!%p1457_p10)
}
  0xff   : > { %1128 = dma.hbm_to_vmem [thread:$0]  (!%p1996_p0), %s1990_s11, 64, %s1985_s7, %s337_s30  }
 0x100   : > { %s378_s20 = scalar_lea.vmem [#allocation7], %s1845_s0  ;;  %s1461_s17 = scalar_lea.hbm %s2004_s23, 32 }
 0x101   : > { %s385_s19 = sshll.u32 %s378_s20, 4  ;;  %p1462_p5 = scmp.ne.s32.totalorder %s2004_s23, %s1461_s17  ;;  %s386_s19 = int_to_ptr.vmem [resolvable:$true] %s385_s19 }
 0x102   : > { %p2242_p8 = scmp.ne.s32.totalorder %s2222_s24, 0  ;;  %s1466_s25 = scalar_lea.hbm %s2241_s22, 64 }
 0x103   : > { %p1467_p9 = scmp.lt.u32.totalorder %s2004_s23, %s2241_s22  ;;  %p1468_p7 = scmp.lt.u32.totalorder %s1466_s25, %s1461_s17 }
 0x104   : > { %p2243_p2 = pneg %p2242_p8  ;;  %p1470_p0 = scmp.lt.u32.totalorder %s1461_s17, %s2004_s23 }
 0x105   : > { %p1469_p6 = por %p1468_p7, %p1467_p9 }
 0x106   : > { %p1464_p1 = pnand %p1462_p5, %p2243_p2 }
 0x107   : > { %p1471_p12 = por %p1470_p0, %p1469_p6 }
 0x108   : > { %p1465_p3 = pneg %p1464_p1 }
 0x10a   : > { %p1472_p11 = pnand %p1471_p12, %p1465_p3 }
 0x10c   : > { %1475 = shalt.err (!%p1472_p11)
}
 0x10d   : > { %s1476_s7 = scalar_lea.vmem %s386_s19, 32  ;;  %p2244_p10 = pmov %p2243_p2 }
 0x10e   : > { %p1477_p4 = scmp.ne.s32.totalorder %s386_s19, %s1476_s7  ;;  %s1642_s0 = smov [#allocation7]  }
 0x10f   : > { %s1481_s11 = sshll.u32 %s1642_s0, 4  ;;  %s1482_s11 = int_to_ptr.vmem [resolvable:$false] %s1481_s11 }
 0x110   : > { %p1479_p5 = pnand %p1477_p4, %p2244_p10  ;;  %s1483_s30 = scalar_lea.vmem %s1482_s11, 64 }
 0x111   : > { %p1484_p1 = scmp.lt.s32.totalorder %s386_s19, %s1482_s11  ;;  %p1485_p13 = scmp.lt.s32.totalorder %s1483_s30, %s1476_s7 }
 0x112   : > { %p1480_p2 = pneg %p1479_p5 }
 0x113   : > { %p1486_p7 = por %p1485_p13, %p1484_p1 }
 0x115   : > { %p1487_p9 = pnand %p1486_p7, %p1480_p2 }
 0x117   : > { %1490 = shalt.err (!%p1487_p9)
}
 0x118   : > { %1134 = dma.hbm_to_vmem [thread:$0]  (!%p2242_p8), %s2004_s23, 32, %s386_s19, %s1847_s2  }
 0x119   : > { %s2245_s4 = sld [smem:[#allocation27_spill]] }
 0x11f   : > { %p2246_p3 = scmp.ne.s32.totalorder %s2245_s4, 0 }
 0x120   : > { %s2055_s6 = sand.u32 (!%p2246_p3), 1, %s1605_s9   ;;  %p2247_p13 = scmp.ne.s32.totalorder (!%p2246_p3), %s2232_s3, 0 }
 0x121   : > { %394 = sbr.rel (%p2246_p3) target bundleno = 1281 (0x501), region = 52  ;;  %s1016_s26 = sshll.u32 (!%p2246_p3), %s2055_s6, 2 }
 0x122   : > { %s397_s20 = scalar_lea.sflag (!%p2246_p3), [#allocation3], %s2055_s6  ;;  %s400_s17 = scalar_lea.vmem (!%p2246_p3), [#allocation2], %s1016_s26 }
 0x128   : > { %1564 = dma.done.wait (%p2247_p13), %s397_s20, 64  }
 0x129   : > { %1566 = vsyncadd (%p2247_p13), %s397_s20, 4294967232  ;;  %s2248_s24 = sld [smem:[#allocation26_spill]]  ;;  %s2249_s2 = sld [smem:[#allocation28_spill]] }
 0x12a   : > { %s407_s19 = sand.u32 1, %s1593_s28  }
 0x12b   : > { %s2067_s12 = sshll.u32 %s407_s19, 2 }
 0x12c   : > { %s409_s25 = scalar_lea.vmem [#allocation5], %s2067_s12 }
 0x12f   : > { %s405_s23 = sand.u32 1, %s2248_s24   ;;  %p2250_p8 = scmp.ne.s32.totalorder %s2249_s2, 0 }
 0x130   : > { %s406_s5 = scalar_lea.sflag [#allocation6], %s405_s23 }
 0x131   : > { %1568 = dma.done.wait (%p2250_p8), %s406_s5, 96  }
 0x132   : > { %1570 = vsyncadd (%p2250_p8), %s406_s5, 4294967200  ;;  %s2074_s18 = sshll.u32 %s407_s19, 1  ;;  %p2251_p6 = scmp.eq.s32.totalorder %s2248_s24, 0 }
 0x133   : > { %s418_s3 = scalar_lea.vmem [#allocation7], %s2074_s18 }
 0x134   : > { %1572 = dma.done.wait (%p2251_p6), [#allocation9], 768   ;;  %p2252_p0 = pmov %p2251_p6 }
 0x136   : > { %1574 = vsyncadd (%p2252_p0), [#allocation9], 4294966528  ;;  %p2253_p12 = pmov %p2252_p0 }
 0x137   : > { %p2254_p11 = pmov %p2252_p0 }
 0x138   : > { %1576 = dma.done.wait (%p2253_p12), [#allocation12], 768  }
 0x139   : > { %1578 = vsyncadd (%p2254_p11), [#allocation12], 4294966528  ;;  %p2255_p4 = pmov %p2252_p0 }
 0x13a   : > { %p2256_p10 = pmov %p2252_p0 }
 0x13b   : > { %1580 = dma.done.wait (%p2255_p4), [#allocation15], 64  }
 0x13c   : > { %1582 = vsyncadd (%p2256_p10), [#allocation15], 4294967232  ;;  %v1643_v0 = vmov 0   ;;  %vm529_vm0 = vcmask 1041408   ;;  %vm522_vm1 = vcmask 31744   ;;  %v1253_v3 = vld [vmem:[#allocation8] sm:$0xff]  }
 0x13d   : > { %1251 = vset.pattern.permute.xlu0 %v1643_v0  ;;  %1252 = vset.pattern.permute.xlu1 %v1643_v0  ;;  %v482_v1 = vld [vmem:[%s400_s17] sm:$0xf]  ;;  %v490_v7 = vld [vmem:[#allocation10 + $0x10] sm:$0xff]  ;;  %v489_v8 = vld [vmem:[#allocation10 + $0x8] sm:$0xff]  ;;  %vm626_vm2 = vcmask 261120   ;;  %v1644_v35 = vmov 0.0  }
 0x13e   : > { %v483_v2 = vpack.c.bf16 %v482_v1, %v482_v1  ;;  %v488_v4 = vld [vmem:[#allocation10] sm:$0xff]  ;;  %1054 = vmatprep.mubr.msk.bf16.mxu0 %vm522_vm1, %v1253_v3  ;;  %v1254_v6 = vld [vmem:[#allocation8 + $0x8] sm:$0xff]   ;;  %504 = vperm.xlu1 %1252, %v490_v7   ;;  %v592_v10 = vld [vmem:[#allocation13] sm:$0xff]  ;;  %vm1645_vm3 = vmmov 0   ;;  %s2257_s21 = sld [smem:[#allocation25_spill]]  ;;  %s2258_s7 = sld [smem:[#allocation24_spill]] }
 0x13f   : > { %494 = vperm.xlu0 %1251, %v488_v4   ;;  %v491_v9 = vld [vmem:[#allocation10 + $0x18] sm:$0xff]  ;;  %v594_v12 = vld [vmem:[#allocation13 + $0x10] sm:$0xff]  ;;  %v595_v13 = vld [vmem:[#allocation13 + $0x18] sm:$0xff]  ;;  %vm761_vm4 = vcmask 1043456   ;;  %vm757_vm5 = vcmask 64512   ;;  %s480_s4 = scalar_lea.vmem [#allocation16], %s1016_s26 }
 0x140   : > { %1080 = vmatprep.subr.msk.bf16.mxu0 %vm529_vm0, %v483_v2  ;;  %v531_v5 = vsel %vm529_vm0, %v483_v2, 0  ;;  %v593_v11 = vld [vmem:[#allocation13 + $0x8] sm:$0xff]  ;;  %v751_v14 = vld [vmem:[#allocation14] sm:$0xf]  ;;  %v1255_v15 = vld [vmem:[#allocation11] sm:$0xff]   ;;  %s823_s20 = sshll.u32 %s480_s4, 4  ;;  %s2105_s20 = int_to_ptr.vmem [resolvable:$true] %s823_s20 }
 0x141   : > { %1053 = vmatpush3.bf16.msra.mxu0 %v531_v5  ;;  %1062 = vmatprep.mubr.msk.bf16.mxu1 %vm626_vm2, %v1255_v15  ;;  %v1256_v34 = vld [vmem:[#allocation11 + $0x8] sm:$0xff]   ;;  %s2259_s2 = sld [smem:[#allocation40_spill]]  ;;  %s808_s19 = scalar_lea.sflag [#allocation4], %s2055_s6 }
 0x142   : > { %509 = vperm.xlu1 %1252, %v491_v9   ;;  %1066 = vmatprep.subr.bf16.mxu0 %v1644_v35  ;;  %v686_v54 = vld [vmem:[%s409_s25] sm:$0xf]  ;;  %s1491_s12 = scalar_lea.vmem %s2105_s20, 64  ;;  %p2260_p2 = scmp.ne.s32.totalorder %s2233_s27, 0 }
 0x143   : > { %499 = vperm.xlu0 %1251, %v489_v8   ;;  %p1492_p5 = scmp.ne.s32.totalorder %s2105_s20, %s1491_s12  ;;  %s1646_s26 = smov [#allocation16]  }
 0x144   : > { %1055 = vmatmul.mubr.msk.bf16.vlgmr.msra.gmra.mrb[0].mxu0 %vm522_vm1, %v1254_v6  ;;  %s1036_s0 = sshll.u32 %s2257_s21, 1  ;;  %s1495_s5 = sshll.u32 %s1646_s26, 4  ;;  %s1496_s5 = int_to_ptr.vmem [resolvable:$false] %s1495_s5 }
 0x145   : > { %1070 = vmatprep.mubr.msk.bf16.mxu0 %vm1645_vm3, %v1644_v35  ;;  %s819_s11 = sadd.s32 %s2258_s7, %s1036_s0  ;;  %p1493_p1 = pnand %p1492_p5, %p2260_p2 }
 0x146   : > { %603 = vperm.xlu1 %1252, %v593_v11   ;;  %s1037_s30 = sshll.u32 %s819_s11, 6  ;;  %s1497_s25 = scalar_lea.vmem %s1496_s5, 128 }
 0x147   : > { %598 = vperm.xlu0 %1251, %v592_v10   ;;  %s2103_s23 = scalar_lea.hbm %s2259_s2, %s1037_s30  ;;  %p1494_p7 = pneg %p1493_p1 }
 0x148   : > { %p1498_p9 = scmp.lt.s32.totalorder %s2105_s20, %s1496_s5  ;;  %p1499_p3 = scmp.lt.s32.totalorder %s1497_s25, %s1491_s12 }
 0x14a   : > { %613 = vperm.xlu1 %1252, %v595_v13   ;;  %p1500_p13 = por %p1499_p3, %p1498_p9 }
 0x14b   : > { %608 = vperm.xlu0 %1251, %v594_v12  }
 0x14c   : > { %p1501_p8 = pnand %p1500_p13, %p1494_p7 }
 0x14f   : > { %754 = vperm.xlu0 %1251, %v751_v14   ;;  %v749_v14 = vld [vmem:[%s418_s3] sm:$0x3] }
 0x1bd   : > { %v505_v16 = vpop.permute.xlu1 %504 }
 0x1be   : > { %v495_v17 = vpop.permute.xlu0 %494 }
 0x1c1   : > { %v510_v21 = vpop.permute.xlu1 %509 }
 0x1c2   : > { %v500_v24 = vpop.permute.xlu0 %499 }
 0x1c5   : > { %v604_v37 = vpop.permute.xlu1 %603 }
 0x1c6   : > { %v599_v36 = vpop.permute.xlu0 %598 }
 0x1c9   : > { %v614_v42 = vpop.permute.xlu1 %613 }
 0x1ca   : > { %v609_v38 = vpop.permute.xlu0 %608 }
 0x1ce   : > { %v755_v15 = vpop.permute.xlu0 %754 }
 0x217   : > { %v1056_v18 = vpop.f32.mrb[0].mxu0 }
 0x218   : > { %v576_v19 = vadd.f32 %v1056_v18, %v505_v16  ;;  %v567_v20 = vpop.f32.mrb[1].mxu0 }
 0x219   : > { %v568_v22 = vadd.f32 %v567_v20, %v495_v17  ;;  %v1057_v23 = vpop.f32.mrb[2].mxu0 }
 0x21a   : > { %v579_v25 = vadd.f32 %v1057_v23, %v510_v21  ;;  %v570_v26 = vpop.f32.mrb[3].mxu0  ;;  %v584_v28 = vmax.f32 %v576_v19, 0.0 }
 0x21b   : > { %v571_v27 = vadd.f32 %v570_v26, %v500_v24  ;;  %v582_v30 = vmax.f32 %v568_v22, 0.0 }
 0x21c   : > { %v585_v29 = vmax.f32 %v579_v25, 0.0 }
 0x21d   : > { %v583_v31 = vmax.f32 %v571_v27, 0.0 }
 0x21e   : > { %v591_v32 = vpack.c.bf16 %v585_v29, %v584_v28 }
 0x21f   : > { %v590_v33 = vpack.c.bf16 %v583_v31, %v582_v30 }
 0x221   : > { %1058 = vmatprep.subr.bf16.mxu1 %v590_v33 }
 0x222   : > { %1059 = vmatpush3.bf16.msra.mxu1 %v590_v33 }
 0x223   : > { %1060 = vmatprep.subr.bf16.mxu1 %v591_v32 }
 0x226   : > { %1061 = vmatpush3.bf16.msra.mxu1 %v591_v32 }
 0x227   : > { %1074 = vmatprep.subr.bf16.mxu1 %v1644_v35 }
 0x229   : > { %1063 = vmatmul.mubr.msk.bf16.vlgmr.msra.gmra.mrb[0].mxu1 %vm626_vm2, %v1256_v34 }
 0x22a   : > { %1076 = vmatprep.mubr.msk.bf16.mxu1 %vm1645_vm3, %v1644_v35 }
 0x2fc   : > { %v1064_v39 = vpop.f32.mrb[0].mxu1 }
 0x2fd   : > { %v676_v40 = vadd.f32 %v1064_v39, %v609_v38  ;;  %v667_v41 = vpop.f32.mrb[1].mxu1 }
 0x2fe   : > { %v668_v43 = vadd.f32 %v667_v41, %v599_v36  ;;  %v1065_v44 = vpop.f32.mrb[2].mxu1 }
 0x2ff   : > { %v679_v45 = vadd.f32 %v1065_v44, %v614_v42  ;;  %v670_v46 = vpop.f32.mrb[3].mxu1  ;;  %v684_v48 = vmax.f32 %v676_v40, 0.0 }
 0x300   : > { %v671_v47 = vadd.f32 %v670_v46, %v604_v37  ;;  %v682_v50 = vmax.f32 %v668_v43, 0.0 }
 0x301   : > { %v685_v49 = vmax.f32 %v679_v45, 0.0 }
 0x302   : > { %v683_v51 = vmax.f32 %v671_v47, 0.0 }
 0x303   : > { %v688_v52 = vpack.c.bf16 %v685_v49, %v684_v48 }
 0x304   : > { %v687_v53 = vpack.c.bf16 %v683_v51, %v682_v50 }
 0x306   : > { %1067 = vmatpush3.bf16.msra.mxu0 %v687_v53 }
 0x307   : > { %1068 = vmatprep.subr.bf16.mxu0 %v1644_v35 }
 0x30a   : > { %1069 = vmatpush3.bf16.msra.mxu0 %v688_v52 }
 0x30d   : > { %1071 = vmatmul.mubr.msk.bf16.vlgmr.msra.gmra.mrb[4].mxu0 %vm626_vm2, %v686_v54 }
 0x3e0   : > { %v726_v55 = vpop.f32.mrb[4].mxu0 }
 0x3e1   : > { %v732_v56 = vrot.slane %v726_v55, 4  ;;  %v1072_v57 = vpop.f32.mrb[5].mxu0 }
 0x3e2   : > { %v729_v58 = vpop.f32.mrb[6].mxu0 }
 0x3e3   : > { %v733_v59 = vmax.f32 %v726_v55, %v732_v56  ;;  %v1073_v60 = vpop.f32.mrb[7].mxu0 }
 0x3e5   : > { %v734_v61 = vrot.slane %v733_v59, 2 }
 0x3e7   : > { %v735_v62 = vmax.f32 %v733_v59, %v734_v61 }
 0x3e9   : > { %v736_v63 = vrot.slane %v735_v62, 1 }
 0x3eb   : > { %v737_v0 = vmax.f32 %v735_v62, %v736_v63 }
 0x3ed   : > { %v738_v1 = vsub.f32 %v726_v55, %v737_v0 }
 0x3ef   : > { %v739_v2 = vmul.f32 1.442695, %v738_v1 }
 0x3f1   : > { %1257 = vpow2.f32 %v739_v2 }
 0x3fb   : > { %v1258_v3 = vpop.eup %1257 }
 0x3fc   : > { %v741_v4 = vrot.slane %v1258_v3, 4 }
 0x3fe   : > { %v742_v5 = vadd.f32 %v1258_v3, %v741_v4 }
 0x400   : > { %v743_v6 = vrot.slane %v742_v5, 2 }
 0x402   : > { %v744_v7 = vadd.f32 %v743_v6, %v742_v5 }
 0x404   : > { %v745_v8 = vrot.slane %v744_v7, 1 }
 0x406   : > { %v746_v9 = vadd.f32 %v745_v8, %v744_v7 }
 0x408   : > { %1259 = vrcp.f32 %v746_v9 }
 0x412   : > { %v1260_v10 = vpop.eup %1259 }
 0x413   : > { %v748_v11 = vmul.f32 %v1260_v10, %v1258_v3 }
 0x415   : > { %v750_v12 = vpack.c.bf16 %v748_v11, %v748_v11 }
 0x417   : > { %v763_v13 = vsel %vm761_vm4, %v750_v12, 0 }
 0x418   : > { %1075 = vmatpush3.bf16.msra.mxu1 %v763_v13 }
 0x41b   : > { %1077 = vmatmul.mubr.msk.bf16.vlgmr.msra.gmra.mrb[4].mxu1 %vm757_vm5, %v749_v14 }
 0x4ee   : > { %v799_v16 = vpop.f32.mrb[4].mxu1 }
 0x4ef   : > { %v800_v17 = vadd.f32 %v799_v16, %v755_v15  ;;  %v1078_v18 = vpop.f32.mrb[5].mxu1 }
 0x4f0   : > { %v802_v19 = vpop.f32.mrb[6].mxu1 }
 0x4f1   : > { %v805_v20 = vmax.f32 %v800_v17, 0.0  ;;  %v1079_v21 = vpop.f32.mrb[7].mxu1 }
 0x4f3   : > { %806 = vst [vmem:[%s480_s4] sm:$0xf] %v805_v20 }
 0x4f4   : > { %1504 = shalt.err (!%p1501_p8)
}
 0x4f5   : > { %s1505_s6 = scalar_lea.hbm %s2103_s23, 64  ;;  %s1509_s21 = scalar_lea.hbm %s2259_s2, 256 }
 0x4f6   : > { %p1506_p6 = scmp.ne.s32.totalorder %s2103_s23, %s1505_s6  ;;  %p1510_p11 = scmp.lt.u32.totalorder %s2103_s23, %s2259_s2 }
 0x4f7   : > { %p1511_p4 = scmp.lt.u32.totalorder %s1509_s21, %s1505_s6  ;;  %p1513_p5 = scmp.lt.u32.totalorder %s1505_s6, %s2103_s23 }
 0x4f8   : > { %p1507_p0 = pnand %p1506_p6, %p2260_p2 }
 0x4f9   : > { %p1512_p10 = por %p1511_p4, %p1510_p11 }
 0x4fa   : > { %p1508_p12 = pneg %p1507_p0 }
 0x4fb   : > { %p1514_p1 = por %p1513_p5, %p1512_p10 }
 0x4fd   : > { %p1515_p7 = pnand %p1514_p1, %p1508_p12 }
 0x4ff   : > { %1518 = shalt.err (!%p1515_p7)
}
 0x500   : > { %1107 = dma.vmem_to_hbm [thread:$0]  (%p2260_p2), %s2105_s20, 64, %s2103_s23, %s808_s19  }
 0x501 PF: > { %s2261_s11 = sld [smem:[#allocation23_spill]]  ;;  %s2262_s30 = sld [smem:[#allocation31_spill]] }
 0x502   : > { %p1150_p9 = scmp.ge.s32.totalorder %s1629_s15, 2 }
 0x507   : > { %s835_s4 = sand.u32 1, %s2261_s11   ;;  %p2263_p3 = scmp.ne.s32.totalorder %s2262_s30, 0 }
 0x508   : > { %s836_s17 = scalar_lea.sflag [#allocation4], %s835_s4 }
 0x509   : > { %p1136_p13 = pnand %p1150_p9, %p2263_p3 }
 0x50b   : > { %1584 = dma.done.wait (!%p1136_p13), %s836_s17, 64  }
 0x50c   : > { %1586 = vsyncadd (!%p1136_p13), %s836_s17, 4294967232  ;;  %s30_s15 = sadd.s32 1, %s1629_s15   ;;  %s2264_s20 = sld [smem:[#allocation29_spill]] }
 0x50d   : > { %p27_p8 = scmp.ge.s32.totalorder %s30_s15, 6   ;;  %s2265_s24 = sld [smem:[#allocation30_spill]] }
 0x50e   : > { %s2266_s27 = smov %s1593_s28  ;;  %s2267_s28 = smov %s1597_s29 }
 0x50f   : > { %s2268_s29 = smov %s1978_s1  ;;  %s2269_s30 = smov %s1605_s9 }
 0x510   : > { %s2270_s9 = smov %s1609_s10  ;;  %s2271_s10 = smov %s1981_s8 }
 0x511   : > { %s2272_s11 = smov %s1621_s13  ;;  %s2273_s12 = smov %s1625_s14 }
 0x512   : > { %s2274_s13 = smov %s2264_s20  ;;  %29 = sbr.rel (!%p27_p8) target bundleno = 24 (0x18), region = 141 }
 0x513   : > { %s2275_s14 = smov %s2265_s24 }
 0x519   :  { %841 = vsyncpa [#allocation3], 1 }
 0x51a   :  { %843 = vsyncpa [#allocation3 + $0x1], 1 }
 0x51b   :  { %844 = vsyncpa [#allocation6], 1 }
 0x51c   :  { %846 = vsyncpa [#allocation6 + $0x1], 1 }
 0x51d   :  { %847 = vsyncpa [#allocation9], 1 }
 0x51e   :  { %848 = vsyncpa [#allocation12], 1 }
 0x51f   :  { %849 = vsyncpa [#allocation15], 1 }
 0x520   :  { %850 = vsyncpa [#allocation4], 1 }
 0x521   :  { %852 = vsyncpa [#allocation4 + $0x1], 1 }

</bundles_post_ra>
